<compile_context>
chip_gen: v7x
topology: tpu7x:2x2x1
jax: 0.10.0
libtpu: 0.0.40
codegen_flags: <defaults>
</compile_context>

<pallas_src>
import functools

import jax
import jax.numpy as jnp
from jax.experimental import pallas as pl
from jax.experimental.pallas import tpu as pltpu

_MIB = 1024 * 1024
_TM_2D = 512  # row-tile height when column tiling is required


def _round_up(x, m):
    return ((x + m - 1) // m) * m


def _vmem_capacity_bytes():
    """Physical VMEM of the attached TPU; conservative (v7x-sized) default."""
    try:
        return int(pltpu.get_tpu_info().vmem_capacity_bytes)
    except Exception:
        return 64 * _MIB


def _choose_row_tile(n_rows, tm_cap):
    if n_rows <= 8:
        return n_rows  # full dim (exempt from the 8-sublane alignment rule)
    tm = min(tm_cap, _round_up(n_rows, 8))
    grid_m = pl.cdiv(n_rows, tm)
    if grid_m == 1:
        # Force >= 2 row tiles so the 'parallel' axis feeds both v7x cores.
        tm = _round_up(pl.cdiv(n_rows, 2), 8)
    elif grid_m % 2 == 1 and grid_m <= 7:
        # Prefer an even number of row tiles for 2-TensorCore balance.
        tm = _round_up(pl.cdiv(n_rows, grid_m + 1), 8)
    return tm


def _choose_tiles(n_rows, n_cols, block_bytes):
    """Returns (tm, tn); full-row blocks whenever an 8-row slab fits budget."""
    row_bytes = 4 * n_cols
    if 8 * row_bytes <= block_bytes:
        # Full-row mode: each DMA is a contiguous HBM slab, column grid = 1.
        tn = n_cols
        tm_cap = max(8, (block_bytes // row_bytes) // 8 * 8)
    else:
        # 2-D tiling: lane-dense (multiple-of-128) column tile.
        tn_cand = (block_bytes // (4 * _TM_2D)) // 128 * 128
        tn = max(128, min(_round_up(n_cols, 128), tn_cand))
        tm_cap = _TM_2D
    tm = _choose_row_tile(n_rows, tm_cap)
    return tm, tn


def _loss_kernel(matrix_ref, mask_ref, pred_ref, out_ref, *,
                 n_rows, n_cols, tm, tn,
                 need_row_mask, need_col_mask, single_col_grid):
    i = pl.program_id(0)

    diff = matrix_ref[...] - pred_ref[...]
    val = diff * diff * mask_ref[...]

    # torch.nansum semantics: NaN entries contribute 0.  Fused in one select
    # with the column-bounds mask (only emitted when M % tn != 0).
    keep = jnp.logical_not(jnp.isnan(val))
    if need_col_mask:
        j = pl.program_id(1)
        cols = j * tn + jax.lax.broadcasted_iota(jnp.int32, (tm, tn), 1)
        keep = keep & (cols < n_cols)
    val = jnp.where(keep, val, 0.0)

    if need_row_mask:
        # Row-bounds mask applied on the cheap (tm, 1) row-sum vector rather
        # than the full tile; padded-row garbage (NaN/Inf) is *replaced* by a
        # select, so it never leaks into the result.
        row_sums = jnp.sum(val, axis=1, keepdims=True)
        rows = i * tm + jax.lax.broadcasted_iota(jnp.int32, (tm, 1), 0)
        partial = jnp.sum(jnp.where(rows < n_rows, row_sums, 0.0))
    else:
        partial = jnp.sum(val)

    if single_col_grid:
        # Pure map: one column block per row tile -> write the partial directly.
        out_ref[...] = jnp.zeros_like(out_ref) + partial
    else:
        j = pl.program_id(1)

        @pl.when(j == 0)
        def _init():
            out_ref[...] = jnp.zeros_like(out_ref)

        out_ref[...] = out_ref[...] + partial


def make_pmf_loss(lam_u: float = 0.3, lam_v: float = 0.3, block_bytes=None):
    """Returns a callable computing the PMF loss with a single Pallas kernel."""

    def pmf_loss(matrix, non_zero_mask, predicted, u_features, v_features):
        n_rows, n_cols = matrix.shape

        if block_bytes is not None:
            blk = int(block_bytes)
            vmem_limit = 48 * _MIB
        else:
            vmem_cap = _vmem_capacity_bytes()
            if vmem_cap >= 100 * _MIB:      # v5e / v6e: 128 MiB physical VMEM
                blk = 8 * _MIB
                vmem_limit = 96 * _MIB
            else:                           # v7x (64 MiB) / unknown
                blk = 4 * _MIB
                vmem_limit = 48 * _MIB

        tm, tn = _choose_tiles(n_rows, n_cols, blk)
        grid_m = pl.cdiv(n_rows, tm)
        grid_n = pl.cdiv(n_cols, tn)

        kernel = functools.partial(
            _loss_kernel,
            n_rows=n_rows, n_cols=n_cols, tm=tm, tn=tn,
            need_row_mask=(n_rows % tm) != 0,
            need_col_mask=(n_cols % tn) != 0,
            single_col_grid=(grid_n == 1),
        )

        grid_spec = pltpu.PrefetchScalarGridSpec(
            num_scalar_prefetch=0,
            grid=(grid_m, grid_n),
            in_specs=[
                pl.BlockSpec((tm, tn), lambda i, j: (i, j)),   # matrix
                pl.BlockSpec((tm, tn), lambda i, j: (i, j)),   # non_zero_mask
                pl.BlockSpec((tm, tn), lambda i, j: (i, j)),   # predicted
            ],
            out_specs=pl.BlockSpec((1, 1, 1), lambda i, j: (i, 0, 0)),
        )

        cost = pl.CostEstimate(
            flops=int(3 * n_rows * n_cols),
            transcendentals=0,
            bytes_accessed=int(4 * (3 * n_rows * n_cols + grid_m)),
        )

        partials = pl.pallas_call(
            kernel,
            out_shape=jax.ShapeDtypeStruct((grid_m, 1, 1), jnp.float32),
            grid_spec=grid_spec,
            compiler_params=pltpu.CompilerParams(
                dimension_semantics=("parallel", "arbitrary"),
                vmem_limit_bytes=vmem_limit,
            ),
            cost_estimate=cost,
        )(matrix, non_zero_mask, predicted)

        # u/v L2-norm regularizers are O((N+M)*D): computed in the wrapper so
        # no (N,D)/(M,D) arrays are lane-padded and pinned in VMEM (per perf
        # review); XLA overlaps this trivially with the pallas_call.
        u_reg = lam_u * jnp.sum(jnp.sqrt(jnp.sum(u_features * u_features, axis=1)))
        v_reg = lam_v * jnp.sum(jnp.sqrt(jnp.sum(v_features * v_features, axis=1)))

        return jnp.sum(partials) + u_reg + v_reg

    return pmf_loss


def reference_loss(matrix, mask, predicted, u, v, lam_u=0.3, lam_v=0.3):
    pred_err = jnp.nansum(((matrix - predicted) ** 2) * mask)
    u_reg = lam_u * jnp.sum(jnp.linalg.norm(u, axis=1))
    v_reg = lam_v * jnp.sum(jnp.linalg.norm(v, axis=1))
    return pred_err + u_reg + v_reg


def _make_inputs(key, n, m, d):
    k1, k2, k3, k4, k5 = jax.random.split(key, 5)
    matrix = jax.random.normal(k1, (n, m), dtype=jnp.float32)
    nan_spots = jax.random.bernoulli(k5, 0.2, (n, m))
    matrix = jnp.where(nan_spots, jnp.nan, matrix)          # unobserved = NaN
    non_zero_mask = jnp.where(nan_spots, 0.0, 1.0).astype(jnp.float32)
    predicted = jax.random.normal(k2, (n, m), dtype=jnp.float32)
    u_features = jax.random.normal(k3, (n, d), dtype=jnp.float32)
    v_features = jax.random.normal(k4, (m, d), dtype=jnp.float32)
    return matrix, non_zero_mask, predicted, u_features, v_features


if __name__ == "__main__":
    key = jax.random.PRNGKey(0)
    k_small, k_big = jax.random.split(key)

    loss_fn = make_pmf_loss(lam_u=0.3, lam_v=0.3)

    # Small shapes: full-row mode, single (8, 16) block, grid (1, 1).
    args_small = _make_inputs(k_small, 8, 16, 8)
    res_small = jax.block_until_ready(loss_fn(*args_small))
    ref_small = reference_loss(*args_small)
    assert jnp.allclose(res_small, ref_small, rtol=1e-5, atol=1e-4), (
        res_small, ref_small)

    # Larger shapes: full-row mode with a forced 2-way row split (grid (2, 1))
    # and a padded last row tile (exercises the row-bounds mask).
    args_big = _make_inputs(k_big, 300, 1200, 8)
    res_big = jax.block_until_ready(loss_fn(*args_big))
    ref_big = reference_loss(*args_big)
    assert jnp.allclose(res_big, ref_big, rtol=2e-4, atol=1e-2), (
        res_big, ref_big)

    # Same data through the 2-D tiled path (tiny block budget forces column
    # tiling): exercises the column-bounds mask and the cross-step accumulator.
    loss_fn_tiled = make_pmf_loss(lam_u=0.3, lam_v=0.3, block_bytes=16 * 1024)
    res_tiled = jax.block_until_ready(loss_fn_tiled(*args_big))
    assert jnp.allclose(res_tiled, ref_big, rtol=2e-4, atol=1e-2), (
        res_tiled, ref_big)

    print("KERNEL_OK")
</pallas_src>

<mosaic_0001>
module attributes {stable_mosaic.version = 11 : i64} {
  func.func @_loss_kernel(%arg0: i32, %arg1: i32, %arg2: memref<8x16xf32, #tpu.memory_space<vmem>>, %arg3: memref<8x16xf32, #tpu.memory_space<vmem>>, %arg4: memref<8x16xf32, #tpu.memory_space<vmem>>, %arg5: memref<1x1x1xf32, #tpu.memory_space<vmem>>) attributes {dimension_semantics = [#tpu.dimension_semantics<parallel>, #tpu.dimension_semantics<arbitrary>], iteration_bounds = array<i64: 1, 1>, scalar_prefetch = 0 : i64, scratch_operands = 0 : i64, tpu.core_type = #tpu.core_type<tc>, window_params = [{transform_indices = @transform_0, window_bounds = array<i64: 8, 16>}, {transform_indices = @transform_1, window_bounds = array<i64: 8, 16>}, {transform_indices = @transform_2, window_bounds = array<i64: 8, 16>}, {transform_indices = @transform_3, window_bounds = array<i64: 1, 1, 1>}]} {
    %c0 = arith.constant 0 : index
    %c0_0 = arith.constant 0 : index
    %0 = vector.load %arg2[%c0, %c0_0] : memref<8x16xf32, #tpu.memory_space<vmem>>, vector<8x16xf32>
    %c0_1 = arith.constant 0 : index
    %c0_2 = arith.constant 0 : index
    %1 = vector.load %arg4[%c0_1, %c0_2] : memref<8x16xf32, #tpu.memory_space<vmem>>, vector<8x16xf32>
    %2 = arith.subf %0, %1 : vector<8x16xf32>
    %3 = arith.mulf %2, %2 : vector<8x16xf32>
    %c0_3 = arith.constant 0 : index
    %c0_4 = arith.constant 0 : index
    %4 = vector.load %arg3[%c0_3, %c0_4] : memref<8x16xf32, #tpu.memory_space<vmem>>, vector<8x16xf32>
    %5 = arith.mulf %3, %4 : vector<8x16xf32>
    %6 = arith.cmpf one, %5, %5 : vector<8x16xf32>
    %cst = arith.constant dense<true> : vector<8x16xi1>
    %7 = arith.xori %6, %cst : vector<8x16xi1>
    %cst_5 = arith.constant 0.000000e+00 : f32
    %8 = vector.broadcast %cst_5 : f32 to vector<8x16xf32>
    %9 = arith.select %7, %5, %8 : vector<8x16xi1>, vector<8x16xf32>
    %10 = vector.shape_cast %9 : vector<8x16xf32> to vector<1x8x16xf32>
    %cst_6 = arith.constant dense<0.000000e+00> : vector<1xf32>
    %11 = vector.multi_reduction <add>, %10, %cst_6 [1, 2] : vector<1x8x16xf32> to vector<1xf32>
    %12 = vector.shape_cast %11 : vector<1xf32> to vector<1x1x1xf32>
    %13 = vector.extract %12[0, 0, 0] : f32 from vector<1x1x1xf32>
    %cst_7 = arith.constant 0.000000e+00 : f32
    %14 = vector.broadcast %cst_7 : f32 to vector<1x1x1xf32>
    %15 = vector.broadcast %13 : f32 to vector<1x1x1xf32>
    %16 = arith.addf %14, %15 : vector<1x1x1xf32>
    %c0_8 = arith.constant 0 : index
    %c0_9 = arith.constant 0 : index
    %c0_10 = arith.constant 0 : index
    %17 = vector.load %arg5[%c0_8, %c0_9, %c0_10] : memref<1x1x1xf32, #tpu.memory_space<vmem>>, vector<1x1x1xf32>
    tpu.vector_store %arg5[%c0_8, %c0_9, %c0_10], %16 {strides = array<i32>} : memref<1x1x1xf32, #tpu.memory_space<vmem>>, vector<1x1x1xf32>,
    return
  }
  func.func @transform_0(%arg0: i32, %arg1: i32) -> (i32, i32) {
    %c0_i32 = arith.constant 0 : i32
    return %arg0, %arg1 : i32, i32
  }
  func.func @transform_1(%arg0: i32, %arg1: i32) -> (i32, i32) {
    %c0_i32 = arith.constant 0 : i32
    return %arg0, %arg1 : i32, i32
  }
  func.func @transform_2(%arg0: i32, %arg1: i32) -> (i32, i32) {
    %c0_i32 = arith.constant 0 : i32
    return %arg0, %arg1 : i32, i32
  }
  func.func @transform_3(%arg0: i32, %arg1: i32) -> (i32, i32, i32) {
    %c0_i32 = arith.constant 0 : i32
    %c0_i32_0 = arith.constant 0 : i32
    %c0_i32_1 = arith.constant 0 : i32
    return %arg0, %c0_i32, %c0_i32_0 : i32, i32, i32
  }
}

</mosaic_0001>

<bundles_post_ra>
// kernel: tpu_custom_call.1
= control target key start
LH: loop header
LB: loop body
LE: loop exit
PB: predicated region body
PF: predicated region fallthrough
CT: control target
= control target key end

     0   :  { %8 = vsyncpa [#allocation3], 0  ;;  %s264_s0 = inlined_call_operand.hbm [shape: f32[8,16], index: 0, kind: input, shape index: {}]   ;;  %s265_s1 = inlined_call_operand.hbm [shape: f32[8,16], index: 1, kind: input, shape index: {}]   ;;  %s266_s2 = inlined_call_operand.hbm [shape: f32[8,16], index: 2, kind: input, shape index: {}]   ;;  %s267_s3 = inlined_call_operand.hbm [shape: f32[1,1,1], index: 3, kind: output, shape index: {}]  }
   0x1   :  { %9 = vsyncpa [#allocation6], 0 }
   0x2   :  { %10 = vsyncpa [#allocation4], 0  ;;  %s191_s12 = smov [#allocation5]   ;;  %s192_s14 = smov [#allocation2]  }
   0x3   :  { %s27_s13 = sshll.u32 %s191_s12, 4  ;;  %s17_s15 = sshll.u32 %s192_s14, 4  ;;  %s28_s13 = int_to_ptr.vmem [resolvable:$true] %s27_s13  ;;  %s18_s15 = int_to_ptr.vmem [resolvable:$true] %s17_s15 }
   0x4   :  { %s97_s18 = scalar_lea.hbm %s265_s1, 128 }
   0x5   :  { %p98_p0 = scmp.ne.s32.totalorder %s265_s1, %s97_s18  ;;  %p101_p1 = scmp.lt.u32.totalorder %s97_s18, %s265_s1 }
   0x7   :  { %p103_p2 = pnand %p101_p1, %p98_p0 }
   0x9   :  { %106 = shalt.err (!%p103_p2)
}
   0xa   :  { %s107_s23 = scalar_lea.vmem %s28_s13, 128  ;;  %p112_p4 = scmp.lt.s32.totalorder %s28_s13, %s28_s13 }
   0xb   :  { %p108_p3 = scmp.ne.s32.totalorder %s28_s13, %s107_s23  ;;  %p113_p5 = scmp.lt.s32.totalorder %s107_s23, %s107_s23 }
   0xd   :  { %p114_p6 = por %p113_p5, %p112_p4 }
   0xf   :  { %p115_p7 = pnand %p114_p6, %p108_p3 }
  0x11   :  { %118 = shalt.err (!%p115_p7)
}
  0x12   :  { %30 = dma.hbm_to_vmem [thread:$0]  %s265_s1, 128, %s28_s13, [#allocation6]  }
  0x13   :  { %s119_s28 = scalar_lea.hbm %s264_s0, 128 }
  0x14   :  { %p120_p8 = scmp.ne.s32.totalorder %s264_s0, %s119_s28  ;;  %p123_p9 = scmp.lt.u32.totalorder %s119_s28, %s264_s0 }
  0x16   :  { %p125_p10 = pnand %p123_p9, %p120_p8 }
  0x18   :  { %128 = shalt.err (!%p125_p10)
}
  0x19   :  { %s129_s6 = scalar_lea.vmem %s18_s15, 128  ;;  %p134_p12 = scmp.lt.s32.totalorder %s18_s15, %s18_s15 }
  0x1a   :  { %p130_p11 = scmp.ne.s32.totalorder %s18_s15, %s129_s6  ;;  %p135_p13 = scmp.lt.s32.totalorder %s129_s6, %s129_s6 }
  0x1c   :  { %p136_p0 = por %p135_p13, %p134_p12 }
  0x1e   :  { %p137_p1 = pnand %p136_p0, %p130_p11 }
  0x20   :  { %140 = shalt.err (!%p137_p1)
}
  0x21   :  { %20 = dma.hbm_to_vmem [thread:$0]  %s264_s0, 128, %s18_s15, [#allocation3]  }
  0x22   :  { %s193_s8 = smov [#allocation7]   ;;  %s141_s12 = scalar_lea.hbm %s266_s2, 128 }
  0x23   :  { %s37_s9 = sshll.u32 %s193_s8, 4  ;;  %p142_p2 = scmp.ne.s32.totalorder %s266_s2, %s141_s12  ;;  %s38_s9 = int_to_ptr.vmem [resolvable:$true] %s37_s9 }
  0x24   :  { %p145_p3 = scmp.lt.u32.totalorder %s141_s12, %s266_s2 }
  0x26   :  { %p147_p4 = pnand %p145_p3, %p142_p2 }
  0x28   :  { %150 = shalt.err (!%p147_p4)
}
  0x29   :  { %s151_s18 = scalar_lea.vmem %s38_s9, 128  ;;  %p156_p6 = scmp.lt.s32.totalorder %s38_s9, %s38_s9 }
  0x2a   :  { %p152_p5 = scmp.ne.s32.totalorder %s38_s9, %s151_s18  ;;  %p157_p7 = scmp.lt.s32.totalorder %s151_s18, %s151_s18 }
  0x2c   :  { %p158_p8 = por %p157_p7, %p156_p6 }
  0x2e   :  { %p159_p9 = pnand %p158_p8, %p152_p5 }
  0x30   :  { %162 = shalt.err (!%p159_p9)
}
  0x31   :  { %40 = dma.hbm_to_vmem [thread:$0]  %s266_s2, 128, %s38_s9, [#allocation6]  }
  0x32   :  { %185 = dma.done.wait [#allocation3], 128  }
  0x33   :  { %186 = vsyncadd [#allocation3], 4294967168 }
  0x34   :  { %187 = dma.done.wait [#allocation6], 256  }
  0x35   :  { %188 = vsyncadd [#allocation6], 4294967040  ;;  %v50_v0 = vld [vmem:[#allocation2] sm:$0xff]  ;;  %v51_v1 = vld [vmem:[#allocation7] sm:$0xff]  ;;  %vm59_vm1 = vcmask 130048   ;;  %vm194_vm2 = vmmov 1  }
  0x36   :  { %v52_v2 = vsub.f32 %v50_v0, %v51_v1  ;;  %v54_v3 = vld [vmem:[#allocation5] sm:$0xff]  ;;  %s195_s2 = smov [#allocation8]   ;;  %vm72_vm4 = vcmask 0  }
  0x37   :  { %s80_s19 = sshll.u32 %s195_s2, 4  ;;  %s81_s19 = int_to_ptr.vmem [resolvable:$true] %s80_s19 }
  0x38   :  { %v53_v4 = vmul.f32 %v52_v2, %v52_v2  ;;  %s163_s21 = scalar_lea.vmem %s81_s19, 16  ;;  %s167_s22 = scalar_lea.vmem %s81_s19, 32 }
  0x39   :  { %p164_p10 = scmp.ne.s32.totalorder %s81_s19, %s163_s21  ;;  %p168_p11 = scmp.lt.s32.totalorder %s81_s19, %s81_s19 }
  0x3a   :  { %v55_v5 = vmul.f32 %v54_v3, %v53_v4  ;;  %p169_p12 = scmp.lt.s32.totalorder %s167_s22, %s163_s21 }
  0x3c   :  { %vm56_vm0 = vcmp.ne.f32.partialorder %v55_v5, %v55_v5  ;;  %p170_p13 = por %p169_p12, %p168_p11 }
  0x3d   :  { %vm57_vm3 = vmxor %vm56_vm0, %vm194_vm2 }
  0x3e   :  { %v58_v6 = vsel %vm57_vm3, %v55_v5, 0.0  ;;  %p171_p0 = pnand %p170_p13, %p164_p10 }
  0x3f   :  { %v60_v7 = vsel %vm59_vm1, %v58_v6, 0.0 }
  0x40   :  { %61 = vadd.xlane.f32.xlu0 %v60_v7 }
  0xcd   :  { %v62_v8 = vpop.xlane.xlu0 %61 }
  0xce   :  { %v63_v9 = vrot.slane %v62_v8, 4 }
  0xd0   :  { %v64_v10 = vadd.f32 %v63_v9, %v62_v8 }
  0xd2   :  { %v65_v11 = vrot.slane %v64_v10, 2 }
  0xd4   :  { %v66_v12 = vadd.f32 %v65_v11, %v64_v10 }
  0xd6   :  { %v67_v13 = vrot.slane %v66_v12, 1 }
  0xd8   :  { %v68_v14 = vadd.f32 %v67_v13, %v66_v12 }
  0xda   :  { %90 = vpush %v68_v14 }
 0x10b   :  { %s91_s20 = spop %90 }
 0x10c   :  { %v70_v15 = vstv %s91_s20 }
 0x10d   :  { %73 = vst.msk [vmem:[#allocation8] sm:$0x1] %vm72_vm4, %v70_v15 }
 0x10e   :  { %174 = shalt.err (!%p171_p0)
}
 0x10f   :  { %s175_s25 = scalar_lea.hbm %s267_s3, 16 }
 0x110   :  { %p176_p1 = scmp.ne.s32.totalorder %s267_s3, %s175_s25  ;;  %p179_p2 = scmp.lt.u32.totalorder %s175_s25, %s267_s3 }
 0x112   :  { %p181_p3 = pnand %p179_p2, %p176_p1 }
 0x114   :  { %184 = shalt.err (!%p181_p3)
}
 0x115   :  { %83 = dma.vmem_to_hbm [thread:$0]  %s81_s19, 16, %s267_s3, [#allocation4]  }
 0x116   :  { %189 = dma.done.wait [#allocation4], 16  }
 0x117   :  { %190 = vsyncadd [#allocation4], 4294967280 }
 0x118   :  { %87 = vsyncpa [#allocation3], 1 }
 0x119   :  { %88 = vsyncpa [#allocation6], 1 }
 0x11a   :  { %89 = vsyncpa [#allocation4], 1 }

</bundles_post_ra>
